<compile_context>
chip_gen: v6e
topology: v6e:2x2x1
jax: 0.10.0
libtpu: 0.0.40
codegen_flags: <defaults>
</compile_context>

<pallas_src>
import jax
import jax.numpy as jnp
import numpy as np
from jax.experimental import pallas as pl
from jax.experimental.pallas import tpu as pltpu

_VMEM_LIMIT_BYTES = 48 * 1024 * 1024     # raised scoped-VMEM limit (valid on v5e/v6e/v7x)
_FUSED_BUDGET_BYTES = 28 * 1024 * 1024   # max estimated VMEM use for the fused path
_BLOCK_BUDGET_BYTES = 4 * 1024 * 1024    # max bytes per (bt, C, t_hw) x/out block


def _round_up(v, m):
    return (v + m - 1) // m * m


def _plan(n, c, hw, itemsize):
    """Pick (batch_tile, hw_tile, padded_hw) for the tiled two-pass path."""
    ceiling = 4096 if c <= 512 else (2048 if c <= 1024 else 1024)
    t_hw = min(_round_up(hw, 128), ceiling)
    bt = 1
    if c < 128:
        # Batch several small-C images per step, but keep >= 2 blocks on the
        # parallel grid axis so both v7x TensorCores get work.
        for cand in (16, 8, 4, 2):
            if (n % cand == 0 and n // cand >= 2
                    and cand * c * t_hw * itemsize <= _BLOCK_BUDGET_BYTES):
                bt = cand
                break
    while t_hw > 128 and bt * c * t_hw * itemsize > _BLOCK_BUDGET_BYTES:
        t_hw -= 128
    hw_pad = _round_up(hw, t_hw)
    return bt, t_hw, hw_pad


# ----------------------------------------------------------------------------
# Fused single-pass kernel: grid (N // BT,)
# ----------------------------------------------------------------------------
def _fused_kernel(gamma_ref, x_ref, o_ref):
    g = gamma_ref[0]                        # scalar gamma from SMEM
    xt = x_ref[...]                         # (BT, C, HW), x's native dtype
    # Gram matrix over the shared spatial axis (same MXU-native contraction
    # pattern as flash-attn's 'bqd,bkd->bqk'; no explicit transpose of xt).
    energy = jnp.einsum("bcm,bdm->bcd", xt, xt,
                        preferred_element_type=jnp.float32)
    # softmax(rowmax(E) - E) == softmax(-E); stable single-reduction form.
    e = jnp.min(energy, axis=-1, keepdims=True) - energy
    p = jnp.exp(e)
    # Exact normalization + gamma folded into the attention matrix.
    attn = (p * (g / jnp.sum(p, axis=-1, keepdims=True))).astype(xt.dtype)
    out = jnp.einsum("bcd,bdm->bcm", attn, xt,
                     preferred_element_type=jnp.float32)
    o_ref[...] = (out + xt.astype(jnp.float32)).astype(o_ref.dtype)


# ----------------------------------------------------------------------------
# Two-pass fallback: pass 1 (Gram accumulate + softmax), grid (N//BT, HW//T_HW)
# ----------------------------------------------------------------------------
def _energy_softmax_kernel(gamma_ref, x_ref, attn_ref, acc_ref):
    k = pl.program_id(1)

    @pl.when(k == 0)
    def _():
        acc_ref[...] = jnp.zeros_like(acc_ref)

    xt = x_ref[...]                         # (BT, C, T_HW)
    acc_ref[...] += jnp.einsum("bcm,bdm->bcd", xt, xt,
                               preferred_element_type=jnp.float32)

    @pl.when(k == pl.num_programs(1) - 1)
    def _():
        g = gamma_ref[0]
        energy = acc_ref[...]
        e = jnp.min(energy, axis=-1, keepdims=True) - energy
        p = jnp.exp(e)
        attn = p * (g / jnp.sum(p, axis=-1, keepdims=True))
        attn_ref[...] = attn.astype(attn_ref.dtype)   # gamma-scaled, x.dtype


# ----------------------------------------------------------------------------
# Two-pass fallback: pass 2 (apply + residual), grid (N//BT, HW//T_HW)
# ----------------------------------------------------------------------------
def _apply_kernel(attn_ref, x_ref, o_ref):
    attn = attn_ref[...]                    # (BT, C, C), gamma already folded
    xt = x_ref[...]                         # (BT, C, T_HW)
    out = jnp.einsum("bcd,bdm->bcm", attn, xt,
                     preferred_element_type=jnp.float32)
    o_ref[...] = (out + xt.astype(jnp.float32)).astype(o_ref.dtype)


def channel_attention(x, gamma, *, force_two_pass=False):
    """x: (N, C, H, W); gamma: array broadcastable to shape (1,)."""
    N, C, H, W = x.shape
    HW = H * W
    itemsize = jnp.dtype(x.dtype).itemsize
    x_flat = x.reshape(N, C, HW)
    gamma_f32 = jnp.asarray(gamma, dtype=jnp.float32).reshape((1,))

    bt, t_hw, hw_pad = _plan(N, C, HW, itemsize)
    n_b = N // bt

    # Estimated VMEM for the fused path: double-buffered in + out slabs plus
    # f32 temporaries (matmul result, f32 residual copy) and softmax temps.
    fused_bytes = bt * C * HW * (4 * itemsize + 8) + bt * C * C * 16

    if not force_two_pass and fused_bytes <= _FUSED_BUDGET_BYTES:
        out_flat = pl.pallas_call(
            _fused_kernel,
            out_shape=jax.ShapeDtypeStruct((N, C, HW), x.dtype),
            grid_spec=pltpu.PrefetchScalarGridSpec(
                num_scalar_prefetch=0,
                grid=(n_b,),
                in_specs=[
                    pl.BlockSpec(memory_space=pltpu.MemorySpace.SMEM),  # gamma
                    pl.BlockSpec((bt, C, HW), lambda n: (n, 0, 0)),     # x slab
                ],
                out_specs=pl.BlockSpec((bt, C, HW), lambda n: (n, 0, 0)),
            ),
            compiler_params=pltpu.CompilerParams(
                dimension_semantics=("parallel",),
                vmem_limit_bytes=_VMEM_LIMIT_BYTES),
        )(gamma_f32, x_flat)
        return out_flat.reshape(N, C, H, W)

    # ---- Two-pass fallback: zero-pad HW to a multiple of the tile (zeros add
    # nothing to the Gram matrix or to attn @ x; padded columns are sliced off).
    if hw_pad != HW:
        x_flat = jnp.pad(x_flat, ((0, 0), (0, 0), (0, hw_pad - HW)))
    n_hw = hw_pad // t_hw

    attn = pl.pallas_call(
        _energy_softmax_kernel,
        out_shape=jax.ShapeDtypeStruct((N, C, C), x.dtype),
        grid_spec=pltpu.PrefetchScalarGridSpec(
            num_scalar_prefetch=0,
            grid=(n_b, n_hw),
            in_specs=[
                pl.BlockSpec(memory_space=pltpu.MemorySpace.SMEM),      # gamma
                pl.BlockSpec((bt, C, t_hw), lambda n, k: (n, 0, k)),    # x tile
            ],
            out_specs=pl.BlockSpec((bt, C, C), lambda n, k: (n, 0, 0)),
            scratch_shapes=[pltpu.VMEM((bt, C, C), jnp.float32)],
        ),
        compiler_params=pltpu.CompilerParams(
            dimension_semantics=("parallel", "arbitrary"),
            vmem_limit_bytes=_VMEM_LIMIT_BYTES),
    )(gamma_f32, x_flat)

    out_flat = pl.pallas_call(
        _apply_kernel,
        out_shape=jax.ShapeDtypeStruct((N, C, hw_pad), x.dtype),
        grid_spec=pltpu.PrefetchScalarGridSpec(
            num_scalar_prefetch=0,
            grid=(n_b, n_hw),
            in_specs=[
                pl.BlockSpec((bt, C, C), lambda n, k: (n, 0, 0)),       # attn
                pl.BlockSpec((bt, C, t_hw), lambda n, k: (n, 0, k)),    # x tile
            ],
            out_specs=pl.BlockSpec((bt, C, t_hw), lambda n, k: (n, 0, k)),
        ),
        compiler_params=pltpu.CompilerParams(
            dimension_semantics=("parallel", "parallel"),
            vmem_limit_bytes=_VMEM_LIMIT_BYTES),
    )(attn, x_flat)

    if hw_pad != HW:
        out_flat = out_flat[:, :, :HW]
    return out_flat.reshape(N, C, H, W)


def channel_attention_ref(x, gamma):
    """Pure-JAX reference mirroring the PyTorch module."""
    N, C, H, W = x.shape
    q = x.reshape(N, C, -1)
    energy = jnp.einsum("ncm,ndm->ncd", q, q, precision="highest")
    energy = jnp.max(energy, axis=-1, keepdims=True) - energy
    attn = jax.nn.softmax(energy, axis=-1)
    out = jnp.einsum("ncd,ndm->ncm", attn, q, precision="highest")
    return gamma[0] * out.reshape(N, C, H, W) + x


if __name__ == "__main__":
    key = jax.random.PRNGKey(0)
    N, C, H, W = 2, 4, 16, 16
    x = jax.random.normal(key, (N, C, H, W), dtype=jnp.float32)
    # Round inputs to bf16-representable values and scale by an exact power of
    # two so the comparison is insensitive to whether any matmul path rounds
    # its f32 inputs to bf16 (MXU) or keeps full f32.
    x = x.astype(jnp.bfloat16).astype(jnp.float32) * 0.5

    # nn.Parameter(torch.zeros(1)) -> gamma starts at zero; also test a
    # nonzero value to exercise the attention path + residual scaling.
    gammas = [jnp.zeros((1,), dtype=jnp.float32),
              jnp.array([0.5], dtype=jnp.float32)]

    for gamma in gammas:
        ref = np.asarray(channel_attention_ref(x, gamma))
        for force in (False, True):   # fused path and tiled two-pass path
            out = jax.block_until_ready(
                channel_attention(x, gamma, force_two_pass=force))
            out = np.asarray(out)
            assert np.allclose(out, ref, atol=5e-3, rtol=5e-3), (
                force, float(np.max(np.abs(out - ref))))

    print("KERNEL_OK")
</pallas_src>

<mosaic_0001>
module attributes {stable_mosaic.version = 11 : i64} {
  func.func @_fused_kernel(%arg0: i32, %arg1: memref<1xf32, #tpu.memory_space<smem>>, %arg2: memref<1x4x256xf32, #tpu.memory_space<vmem>>, %arg3: memref<1x4x256xf32, #tpu.memory_space<vmem>>) attributes {dimension_semantics = [#tpu.dimension_semantics<parallel>], iteration_bounds = array<i64: 2>, scalar_prefetch = 0 : i64, scratch_operands = 0 : i64, tpu.core_type = #tpu.core_type<tc>, window_params = [{transform_indices = @transform_0, window_bounds = array<i64: 1>}, {transform_indices = @transform_1, window_bounds = array<i64: 1, 4, 256>}, {transform_indices = @transform_2, window_bounds = array<i64: 1, 4, 256>}]} {
    %c0 = arith.constant 0 : index
    %0 = memref.load %arg1[%c0] : memref<1xf32, #tpu.memory_space<smem>>
    %c0_0 = arith.constant 0 : index
    %c0_1 = arith.constant 0 : index
    %c0_2 = arith.constant 0 : index
    %1 = vector.load %arg2[%c0_0, %c0_1, %c0_2] : memref<1x4x256xf32, #tpu.memory_space<vmem>>, vector<1x4x256xf32>
    "tpu.trace_start"() <{level = 10 : i32, message = "bcm,bdm->bcd"}> : () -> ()
    %cst = arith.constant dense<0.000000e+00> : vector<1x4x4xf32>
    %2 = tpu.matmul %1, %1, %cst {dimension_numbers = #tpu.dot_dimension_numbers<[2], [2], [1], [1], [0, 0, 0, 1, 1, 1], [0], [0]>} : vector<1x4x256xf32>, vector<1x4x256xf32>, vector<1x4x4xf32> -> vector<1x4x4xf32>
    "tpu.trace_stop"() : () -> ()
    %cst_3 = arith.constant dense<0x7F800000> : vector<1x4xf32>
    %3 = vector.multi_reduction <minimumf>, %2, %cst_3 [2] : vector<1x4x4xf32> to vector<1x4xf32>
    %4 = vector.shape_cast %3 : vector<1x4xf32> to vector<1x4x1xf32>
    %5 = vector.broadcast %4 : vector<1x4x1xf32> to vector<1x4x4xf32>
    %6 = arith.subf %5, %2 : vector<1x4x4xf32>
    %7 = math.exp %6 : vector<1x4x4xf32>
    %cst_4 = arith.constant dense<0.000000e+00> : vector<1x4xf32>
    %8 = vector.multi_reduction <add>, %7, %cst_4 [2] : vector<1x4x4xf32> to vector<1x4xf32>
    %9 = vector.shape_cast %8 : vector<1x4xf32> to vector<1x4x1xf32>
    %10 = vector.broadcast %0 : f32 to vector<1x4x1xf32>
    %11 = arith.divf %10, %9 : vector<1x4x1xf32>
    %12 = vector.broadcast %11 : vector<1x4x1xf32> to vector<1x4x4xf32>
    %13 = arith.mulf %7, %12 : vector<1x4x4xf32>
    "tpu.trace_start"() <{level = 10 : i32, message = "bcd,bdm->bcm"}> : () -> ()
    %cst_5 = arith.constant dense<0.000000e+00> : vector<1x4x256xf32>
    %14 = tpu.matmul %13, %1, %cst_5 {dimension_numbers = #tpu.dot_dimension_numbers<[2], [1], [1], [2], [0, 0, 0, 1, 1, 2], [0], [0]>} : vector<1x4x4xf32>, vector<1x4x256xf32>, vector<1x4x256xf32> -> vector<1x4x256xf32>
    "tpu.trace_stop"() : () -> ()
    %15 = arith.addf %14, %1 : vector<1x4x256xf32>
    %c0_6 = arith.constant 0 : index
    %c0_7 = arith.constant 0 : index
    %c0_8 = arith.constant 0 : index
    %16 = vector.load %arg3[%c0_6, %c0_7, %c0_8] : memref<1x4x256xf32, #tpu.memory_space<vmem>>, vector<1x4x256xf32>
    tpu.vector_store %arg3[%c0_6, %c0_7, %c0_8], %15 {strides = array<i32>} : memref<1x4x256xf32, #tpu.memory_space<vmem>>, vector<1x4x256xf32>,
    return
  }
  func.func @transform_0(%arg0: i32) -> i32 {
    %c0_i32 = arith.constant 0 : i32
    %c0_i32_0 = arith.constant 0 : i32
    return %c0_i32 : i32
  }
  func.func @transform_1(%arg0: i32) -> (i32, i32, i32) {
    %c0_i32 = arith.constant 0 : i32
    %c0_i32_0 = arith.constant 0 : i32
    %c0_i32_1 = arith.constant 0 : i32
    return %arg0, %c0_i32, %c0_i32_0 : i32, i32, i32
  }
  func.func @transform_2(%arg0: i32) -> (i32, i32, i32) {
    %c0_i32 = arith.constant 0 : i32
    %c0_i32_0 = arith.constant 0 : i32
    %c0_i32_1 = arith.constant 0 : i32
    return %arg0, %c0_i32, %c0_i32_0 : i32, i32, i32
  }
}

</mosaic_0001>

<bundles_post_ra>
// kernel: tpu_custom_call.1
= control target key start
LH: loop header
LB: loop body
LE: loop exit
PB: predicated region body
PF: predicated region fallthrough
CT: control target
= control target key end

     0   :  { %s751_s0 = inlined_call_operand.<no memory space> [shape: f32[1], index: 0, kind: input, shape index: {}]   ;;  %s752_s1 = inlined_call_operand.hbm [shape: f32[2,4,256], index: 1, kind: input, shape index: {}]   ;;  %s753_s2 = inlined_call_operand.hbm [shape: f32[2,4,256], index: 2, kind: output, shape index: {}]  }
   0x1   :  { %7 = sst [smem:[#allocation2]] %s751_s0 }
   0x2   :  { %8 = vsyncpa [#allocation4], 0 }
   0x3   :  { %10 = vsyncpa [#allocation4 + $0x1], 0 }
   0x4   :  { %11 = vsyncpa [#allocation5], 0 }
   0x5   :  { %13 = vsyncpa [#allocation5 + $0x1], 0  ;;  %s606_s11 = smov 0   ;;  %s608_s12 = smov 0  }
   0x6   :  { %s610_s13 = smov 0   ;;  %s612_s14 = smov 0  }
   0x7 LB: > { %s627_s0 = sadd.s32 4294967295, %s583_s14   ;;  %s420_s15 = sadd.s32 4294967294, %s583_s14   ;;  %s583_s14 = sphi %s612_s14, %s770_s14   ;;  %s579_s13 = sphi %s610_s13, %s769_s13   ;;  %s575_s12 = sphi %s608_s12, %s768_s12   ;;  %s571_s11 = sphi %s606_s11, %s767_s11  }
   0x8   : > { %s631_s16 = sadd.s32 1, %s583_s14   ;;  %s47_s17 = sadd.s32 1, %s579_s13 }
   0x9   : > { %s44_s18 = ssub.s32 %s583_s14, %s631_s16  ;;  %p54_p0 = scmp.ne.s32.totalorder %s579_s13, %s575_s12 }
   0xa   : > { %p45_p1 = scmp.eq.s32.totalorder %s44_s18, 0  ;;  %p55_p2 = scmp.eq.s32.totalorder %s583_s14, 0 }
   0xb   : > { %p60_p3 = scmp.ne.s32.totalorder %s575_s12, %s571_s11  ;;  %p61_p4 = scmp.eq.s32.totalorder %s627_s0, 0 }
   0xc   : > { %s643_s19 = scalar_select %p45_p1, %s579_s13, %s47_s17  }
   0xd   : > { %p645_p5 = por %p55_p2, %p54_p0  ;;  %p649_p6 = por %p61_p4, %p60_p3 }
   0xe   : > { %p84_p7 = scmp.eq.s32.totalorder %s627_s0, 1  ;;  %p90_p8 = scmp.eq.s32.totalorder %s420_s15, 1 }
   0xf   : > { %s757_s21 = scalar_select %p649_p6, 1, 0 }
  0x10   : > { %p451_p10 = scmp.lt.s32.totalorder %s583_s14, 2  ;;  %p656_p11 = por %p84_p7, %p54_p0 }
  0x11   : > { %p660_p12 = por %p90_p8, %p60_p3  ;;  %s113_s24 = sand.u32 1, %s579_s13  }
  0x12   : > { %s758_s22 = scalar_select %p656_p11, 1, 0 }
  0x13   : > { %s759_s23 = scalar_select %p660_p12, 1, 0 }
  0x14   : > { %s437_s25 = sshll.u32 %s583_s14, 7  ;;  %s423_s26 = sshll.u32 %s113_s24, 3 }
  0x15   : > { %s669_s29 = scalar_lea.hbm %s752_s1, %s437_s25  ;;  %s117_s30 = scalar_lea.vmem [#allocation3], %s423_s26 }
  0x16   : > { %s125_s3 = sshll.u32 %s117_s30, 4  ;;  %p673_p13 = pnand %p451_p10, %p645_p5  ;;  %s677_s3 = int_to_ptr.vmem [resolvable:$true] %s125_s3 }
  0x17   : > { %s114_s5 = scalar_lea.sflag [#allocation4], %s113_s24  ;;  %s491_s6 = scalar_lea.hbm %s669_s29, 128 }
  0x18   : > { %p492_p2 = scmp.ne.s32.totalorder %s669_s29, %s491_s6  ;;  %p493_p3 = pneg %p673_p13 }
  0x19   : > { %s496_s9 = scalar_lea.hbm %s752_s1, 256  ;;  %p497_p5 = scmp.lt.s32.totalorder %s669_s29, %s752_s1 }
  0x1a   : > { %p494_p4 = pnand %p493_p3, %p492_p2  ;;  %p498_p8 = scmp.lt.s32.totalorder %s496_s9, %s491_s6 }
  0x1c   : > { %p495_p7 = pneg %p494_p4  ;;  %p499_p10 = por %p498_p8, %p497_p5 }
  0x1e   : > { %p500_p9 = pnand %p499_p10, %p495_p7 }
  0x20   : > { %503 = shalt.err (!%p500_p9)
}
  0x21   : > { %s504_s17 = scalar_lea.vmem %s677_s3, 128  ;;  %s585_s18 = smov [#allocation3]  }
  0x22   : > { %p505_p0 = scmp.ne.s32.totalorder %s677_s3, %s504_s17  ;;  %s509_s20 = sshll.u32 %s585_s18, 4  ;;  %s510_s20 = int_to_ptr.vmem [resolvable:$false] %s509_s20 }
  0x23   : > { %s511_s24 = scalar_lea.vmem %s510_s20, 256  ;;  %p512_p4 = scmp.lt.s32.totalorder %s677_s3, %s510_s20 }
  0x24   : > { %p507_p1 = pnand %p505_p0, %p493_p3  ;;  %p513_p12 = scmp.lt.s32.totalorder %s511_s24, %s504_s17 }
  0x26   : > { %p508_p2 = pneg %p507_p1  ;;  %p514_p11 = por %p513_p12, %p512_p4 }
  0x28   : > { %p515_p6 = pnand %p514_p11, %p508_p2 }
  0x2a   : > { %518 = shalt.err (!%p515_p6)
}
  0x2b   : > { %446 = dma.hbm_to_vmem [thread:$0]  (!%p673_p13), %s669_s29, 128, %s677_s3, %s114_s5  }
  0x2c   : > { %p761_p9 = scmp.lt.s32.totalorder %s583_s14, 3  ;;  %p762_p7 = scmp.ge.s32.totalorder %s583_s14, 1 }
  0x2e   : > { %p131_p0 = pnand %p762_p7, %p761_p9 }
  0x2f   : > { %s704_s25 = sand.u32 (!%p131_p0), 1, %s575_s12   ;;  %p763_p6 = scmp.ne.s32.totalorder (!%p131_p0), %s757_s21, 0 }
  0x30   : > { %134 = sbr.rel (%p131_p0) target bundleno = 780 (0x30c), region = 28  ;;  %s427_s26 = sshll.u32 (!%p131_p0), %s704_s25, 3 }
  0x31   : > { %s137_s27 = scalar_lea.sflag (!%p131_p0), [#allocation4], %s704_s25  ;;  %s140_s28 = scalar_lea.vmem (!%p131_p0), [#allocation3], %s427_s26 }
  0x35   : > { %562 = dma.done.wait (%p763_p6), %s137_s27, 128  }
  0x36   : > { %564 = vsyncadd (%p763_p6), %s137_s27, 4294967168  ;;  %v162_v0 = vld [vmem:[%s140_s28] sm:$0xff]  ;;  %vm236_vm0 = vcmask 27648   ;;  %vm254_vm1 = vcmask 1043456   ;;  %v586_v10 = vmov 0.0   ;;  %s161_s21 = sld [smem:[#allocation2]] }
  0x37   : > { %v164_v1 = vcombine.high %v162_v0, %v162_v0  ;;  %323 = vmatprep.mubr.f32.mxu1 %v586_v10  ;;  %vm250_vm2 = vcmask 31744   ;;  %s438_s29 = sshll.u32 %s627_s0, 7  ;;  %s160_s30 = scalar_lea.vmem [#allocation6], %s427_s26 }
  0x38   : > { %s350_s3 = sshll.u32 %s160_s30, 4  ;;  %s348_s6 = scalar_lea.hbm %s753_s2, %s438_s29  ;;  %s351_s3 = int_to_ptr.vmem [resolvable:$true] %s350_s3 }
  0x39   : > { %196 = vmatprep.subr.mxu0 %v164_v1  ;;  %230 = vmatprep.mubr.f32.mxu0 %v164_v1  ;;  %s336_s7 = scalar_lea.sflag [#allocation5], %s704_s25  ;;  %s519_s8 = scalar_lea.vmem %s351_s3, 128 }
  0x3a   : > { %197 = vmatpush1.xpose.msra.mxu0 %v162_v0  ;;  %429 = vmatprep.subr.msk.mxu1 %vm254_vm1, %v164_v1  ;;  %p520_p11 = scmp.ne.s32.totalorder %s351_s3, %s519_s8  ;;  %p764_p12 = scmp.ne.s32.totalorder %s758_s22, 0 }
  0x3b   : > { %430 = vmatpush1.msk.msra.mxu1 %vm254_vm1, %v162_v0  ;;  %s587_s9 = smov [#allocation6]  }
  0x3c   : > { %v246_v12 = vstv %s161_s21  ;;  %p521_p13 = pnand %p520_p11, %p764_p12  ;;  %s523_s0 = sshll.u32 %s587_s9, 4  ;;  %s524_s0 = int_to_ptr.vmem [resolvable:$false] %s523_s0 }
  0x3d   : > { %231 = vmatmul.mubr.f32.vlgmr.msra.gmra.mxu0 %v162_v0  ;;  %s525_s10 = scalar_lea.vmem %s524_s0, 256  ;;  %p526_p3 = scmp.lt.s32.totalorder %s351_s3, %s524_s0 }
  0x3e   : > { %p522_p1 = pneg %p521_p13  ;;  %p527_p5 = scmp.lt.s32.totalorder %s525_s10, %s519_s8 }
  0x40   : > { %p528_p8 = por %p527_p5, %p526_p3 }
  0x42   : > { %p529_p10 = pnand %p528_p8, %p522_p1 }
  0xfd   : > { %v232_v2 = vpop.f32.mrf.mxu0 }
  0xfe   : > { %v237_v3 = vsel %vm236_vm0, %v232_v2, inf }
  0xff   : > { %238 = vmin.xlane.f32.xlu0 %v237_v3  ;;  %v234_v4 = vpop.f32.mrf.mxu0 }
 0x188   : > { %v239_v5 = vpop.xlane.xlu0 %238 }
 0x189   : > { %v240_v6 = vsub.f32 %v239_v5, %v232_v2 }
 0x18b   : > { %v241_v7 = vmul.f32 1.442695, %v240_v6 }
 0x18d   : > { %487 = vpow2.f32 %v241_v7 }
 0x19a   : > { %v488_v8 = vpop.eup %487 }
 0x19b   : > { %v243_v9 = vsel %vm236_vm0, %v488_v8, 0.0 }
 0x19c   : > { %244 = vadd.xlane.f32.xlu0 %v243_v9 }
 0x225   : > { %v245_v11 = vpop.xlane.xlu0 %244 }
 0x226   : > { %489 = vrcp.f32 %v245_v11 }
 0x233   : > { %v490_v13 = vpop.eup %489 }
 0x234   : > { %v248_v14 = vmul.f32 %v490_v13, %v246_v12 }
 0x236   : > { %v249_v15 = vmul.f32 %v488_v8, %v248_v14 }
 0x238   : > { %431 = vmatmul.mubr.msk.f32.vlgmr.msra.gmra.mxu1 %vm250_vm2, %v249_v15 }
 0x2f8   : > { %v325_v16 = vpop.f32.mrf.mxu1 }
 0x2f9   : > { %v326_v18 = vadd.f32 %v325_v16, %v162_v0 }
 0x2fa   : > { %v327_v17 = vpop.f32.mrf.mxu1 }
 0x2fb   : > { %v328_v19 = vadd.f32 %v327_v17, %v164_v1 }
 0x2fd   : > { %v332_v20 = vcombine.low %v326_v18, %v328_v19 }
 0x2ff   : > { %334 = vst [vmem:[%s160_s30] sm:$0xff] %v332_v20 }
 0x300   : > { %532 = shalt.err (!%p529_p10)
}
 0x301   : > { %s533_s15 = scalar_lea.hbm %s348_s6, 128  ;;  %s537_s20 = scalar_lea.hbm %s753_s2, 256 }
 0x302   : > { %p534_p2 = scmp.ne.s32.totalorder %s348_s6, %s533_s15  ;;  %p538_p7 = scmp.lt.s32.totalorder %s348_s6, %s753_s2 }
 0x303   : > { %p539_p0 = scmp.lt.s32.totalorder %s537_s20, %s533_s15 }
 0x304   : > { %p535_p4 = pnand %p534_p2, %p764_p12 }
 0x305   : > { %p540_p6 = por %p539_p0, %p538_p7 }
 0x306   : > { %p536_p9 = pneg %p535_p4 }
 0x308   : > { %p541_p11 = pnand %p540_p6, %p536_p9 }
 0x30a   : > { %544 = shalt.err (!%p541_p11)
}
 0x30b   : > { %441 = dma.vmem_to_hbm [thread:$0]  (%p764_p12), %s351_s3, 128, %s348_s6, %s336_s7  }
 0x30c PF: > { %s362_s26 = sand.u32 1, %s571_s11   ;;  %p765_p13 = scmp.ne.s32.totalorder %s759_s23, 0 }
 0x30d   : > { %p766_p1 = scmp.ge.s32.totalorder %s583_s14, 2  ;;  %s363_s27 = scalar_lea.sflag [#allocation5], %s362_s26 }
 0x30f   : > { %p448_p3 = pnand %p766_p1, %p765_p13 }
 0x311   : > { %p449_p5 = pneg %p448_p3 }
 0x313   : > { %566 = dma.done.wait (%p449_p5), %s363_s27, 128  }
 0x314   : > { %568 = vsyncadd (%p449_p5), %s363_s27, 4294967168  ;;  %p16_p8 = scmp.ge.s32.totalorder %s631_s16, 4   ;;  %s767_s11 = smov %s575_s12 }
 0x315   : > { %s768_s12 = smov %s579_s13  ;;  %s769_s13 = smov %s643_s19 }
 0x316   : > { %s770_s14 = smov %s631_s16  ;;  %18 = sbr.rel (!%p16_p8) target bundleno = 7 (0x7), region = 73 }
 0x31b   :  { %368 = vsyncpa [#allocation4], 1 }
 0x31c   :  { %370 = vsyncpa [#allocation4 + $0x1], 1 }
 0x31d   :  { %371 = vsyncpa [#allocation5], 1 }
 0x31e   :  { %373 = vsyncpa [#allocation5 + $0x1], 1 }

</bundles_post_ra>
